<compile_context>
chip_gen: v7x
topology: tpu7x:2x2x1
jax: 0.10.0
libtpu: 0.0.40
codegen_flags: <defaults>
</compile_context>

<pallas_src>
import functools

import jax
import jax.numpy as jnp
from jax.experimental import pallas as pl
from jax.experimental.pallas import tpu as pltpu

LANES = 128
SUBLANES = 8


def _pow_gamma(d, gamma):
    # (1 - pt) ** gamma: repeated multiplies for small integer gamma (avoids the
    # log+exp pow path on the EUP).
    g = float(gamma)
    if g.is_integer() and 0 <= int(g) <= 8:
        gi = int(g)
        if gi == 0:
            return jnp.ones_like(d)
        w = d
        for _ in range(gi - 1):
            w = w * d
        return w
    return d ** jnp.float32(g)


def _focal_loss_kernel(x_ref, t_ref, o_ref, *, alpha, gamma, inv_n,
                       tile_rows, inner_steps, m_rows, need_mask,
                       binary_targets):
    i = pl.program_id(0)
    j = pl.program_id(1)

    # Output block is resident across the inner ("arbitrary") axis -> accumulator.
    @pl.when(j == 0)
    def _():
        o_ref[...] = jnp.zeros_like(o_ref)

    p = x_ref[...].astype(jnp.float32)
    t = t_ref[...].astype(jnp.float32)

    if need_mask:
        # Row-only validity compare (every lane of a valid row is valid): handles
        # both the ragged last real block and fully out-of-range blocks from the
        # rounded-up 2-way outer split. Applied BEFORE any log so padded garbage
        # can never produce NaN; (p=1, t=1) contributes exactly 0 loss.
        blk = i * inner_steps + j
        base_row = blk * tile_rows
        rows = jax.lax.broadcasted_iota(jnp.int32, p.shape, 0)
        valid = (base_row + rows) < m_rows
        p = jnp.where(valid, p, 1.0)
        t = jnp.where(valid, t, 1.0)

    if binary_targets:
        # Exact only for hard {0,1} targets: 1 EUP transcendental per element.
        pt = jnp.where(t > 0.5, p, 1.0 - p)
        bce = -jnp.maximum(jnp.log(pt), -100.0)
        d = 1.0 - pt
    else:
        # torch BCE clamps the log terms at -100. Clamp BEFORE the multiply so
        # 0 * (-100) (not 0 * -inf) keeps masked / t-weighted terms NaN-free.
        log_p = jnp.maximum(jnp.log(p), -100.0)
        log_1mp = jnp.maximum(jnp.log(1.0 - p), -100.0)
        bce = -(t * log_p + (1.0 - t) * log_1mp)
        pt = jnp.exp(-bce)
        d = 1.0 - pt

    f_loss = (alpha * _pow_gamma(d, gamma)) * bce  # (tile_rows, LANES) f32

    tr = f_loss.shape[0]
    if tr % SUBLANES == 0:
        # Pure cross-vreg VPU adds down to one (8, 128) vreg.
        part = f_loss.reshape(tr // SUBLANES, SUBLANES, LANES).sum(axis=0)
        o_ref[...] += part
    else:
        # Only reachable when the whole slab is a single block with <8 or a
        # non-multiple-of-8 row count; a one-off row-sum is fine there.
        o_ref[0:1, :] += jnp.sum(f_loss, axis=0, keepdims=True)

    # Apply the 1/N mean scale exactly once, at the last inner step.
    @pl.when(j == pl.num_programs(1) - 1)
    def _():
        o_ref[...] = o_ref[...] * inv_n


def _focal_terms(p, t, alpha, gamma):
    # Plain-JAX per-element focal loss (used for the tail / tiny-input fallback).
    log_p = jnp.maximum(jnp.log(p), -100.0)
    log_1mp = jnp.maximum(jnp.log(1.0 - p), -100.0)
    bce = -(t * log_p + (1.0 - t) * log_1mp)
    pt = jnp.exp(-bce)
    return alpha * (1.0 - pt) ** gamma * bce


def focal_loss(inputs, targets, alpha=0.8, gamma=2, *, tile_rows=None,
               binary_targets=False):
    assert inputs.shape == targets.shape
    n_true = int(inputs.size)

    # Keep native dtypes; the f32 cast happens on the VPU inside the kernel
    # (bf16 inputs halve HBM traffic for this bandwidth-bound kernel).
    x = inputs.reshape(-1)
    t = targets.reshape(-1)

    m = n_true // LANES        # full 128-lane rows through the kernel
    n_tail = n_true % LANES    # <128 trailing elements -> tiny XLA epilogue

    if m == 0:
        # Fewer than 128 elements: a kernel launch is not worth it.
        return jnp.mean(_focal_terms(x.astype(jnp.float32),
                                     t.astype(jnp.float32), alpha, gamma))

    inv_n = 1.0 / float(n_true)

    # Lane-dense (m, 128) slab. When n % 128 == 0 this is a free bitcast reshape;
    # otherwise only the aligned prefix is fed to the kernel (no jnp.pad copy of
    # both full arrays).
    # TODO(synk): a fully zero-copy ragged path would need a 1-D manual-DMA kernel.
    x2 = x[: m * LANES].reshape(m, LANES)
    t2 = t[: m * LANES].reshape(m, LANES)

    # Big blocks to amortize the ~0.35us per-grid-step pipeline overhead.
    # tr=4096 f32 -> 2 MiB/input block; 8192 -> 4 MiB/input block. Both fit the
    # explicit VMEM budget below on v5e/v6e/v7x.
    if tile_rows is None:
        tile_rows = 8192 if m >= 2 * 8192 else 4096
    tile_rows = max(SUBLANES, (int(tile_rows) // SUBLANES) * SUBLANES)
    tile_rows = min(tile_rows, 8192)
    tr = m if m <= tile_rows else tile_rows

    steps = pl.cdiv(m, tr)
    # Always split 2-way across the outer "parallel" axis when there is more than
    # one step (v7x megacore), even for odd step counts: out-of-range blocks are
    # neutralized by the in-kernel row mask + a clamped input index_map.
    n_par = 2 if steps >= 2 else 1
    inner = pl.cdiv(steps, n_par)

    need_mask = (m % tr != 0) or (n_par * inner != steps)

    kernel = functools.partial(
        _focal_loss_kernel,
        alpha=float(alpha),
        gamma=gamma,
        inv_n=inv_n,
        tile_rows=tr,
        inner_steps=inner,
        m_rows=m,
        need_mask=need_mask,
        binary_targets=binary_targets,
    )

    last_blk = steps - 1
    in_map = lambda i, j: (jnp.minimum(i * inner + j, last_blk), 0)

    # Explicit VMEM budget: 2 inputs x 2 pipeline buffers x one block + headroom
    # (output / scratch are tiny). Well under physical VMEM on all generations.
    blk_bytes = tr * LANES * (x2.dtype.itemsize + t2.dtype.itemsize)
    vmem_limit = int(min(100 << 20, max(16 << 20, 2 * blk_bytes + (4 << 20))))

    out = pl.pallas_call(
        kernel,
        out_shape=jax.ShapeDtypeStruct((SUBLANES, n_par * LANES), jnp.float32),
        grid_spec=pltpu.PrefetchScalarGridSpec(
            num_scalar_prefetch=0,
            grid=(n_par, inner),
            in_specs=[
                pl.BlockSpec((tr, LANES), in_map),
                pl.BlockSpec((tr, LANES), in_map),
            ],
            out_specs=pl.BlockSpec((SUBLANES, LANES), lambda i, j: (0, i)),
        ),
        compiler_params=pltpu.CompilerParams(
            # TODO(synk): verify with xprof that this shards across both TCs on
            # v7x; if not, switch the outer axis to pltpu.CORE_PARALLEL.
            dimension_semantics=("parallel", "arbitrary"),
            vmem_limit_bytes=vmem_limit,
        ),
    )(x2, t2)

    # Tiny (8, n_par*128) cross-lane reduce done by XLA.
    total = jnp.sum(out)

    if n_tail:
        tail = _focal_terms(x[m * LANES:].astype(jnp.float32),
                            t[m * LANES:].astype(jnp.float32), alpha, gamma)
        total = total + jnp.sum(tail) * inv_n
    return total


def focal_loss_ref(inputs, targets, alpha=0.8, gamma=2):
    p = inputs.astype(jnp.float32)
    t = targets.astype(jnp.float32)
    bce = -(t * jnp.maximum(jnp.log(p), -100.0)
            + (1.0 - t) * jnp.maximum(jnp.log(1.0 - p), -100.0))
    pt = jnp.exp(-bce)
    return jnp.mean(alpha * (1.0 - pt) ** gamma * bce)


if __name__ == "__main__":
    key = jax.random.PRNGKey(0)
    k1, k2, k3, k4 = jax.random.split(key, 4)

    # 1) Small NCHW-shaped probabilities (post-sigmoid) and binary targets.
    shape = (2, 4, 16, 16)
    inputs = jax.random.uniform(k1, shape, dtype=jnp.float32,
                                minval=0.01, maxval=0.99)
    targets = (jax.random.uniform(k2, shape, dtype=jnp.float32) > 0.5).astype(jnp.float32)

    out = jax.block_until_ready(focal_loss(inputs, targets, alpha=0.8, gamma=2))
    ref = focal_loss_ref(inputs, targets, alpha=0.8, gamma=2)
    assert jnp.allclose(out, ref, rtol=1e-5, atol=1e-6), (out, ref)

    # 2) Ragged size (not a multiple of 128) + forced small tile: exercises the
    #    2-way outer split, clamped index_map, in-kernel row mask and XLA tail.
    shape2 = (3, 5, 9, 9)  # 1215 elements -> 9 full rows + 63-element tail
    inputs2 = jax.random.uniform(k3, shape2, dtype=jnp.float32,
                                 minval=0.01, maxval=0.99)
    targets2 = (jax.random.uniform(k4, shape2, dtype=jnp.float32) > 0.5).astype(jnp.float32)

    out2 = jax.block_until_ready(
        focal_loss(inputs2, targets2, alpha=0.8, gamma=2, tile_rows=8))
    ref2 = focal_loss_ref(inputs2, targets2, alpha=0.8, gamma=2)
    assert jnp.allclose(out2, ref2, rtol=1e-5, atol=1e-6), (out2, ref2)

    # 3) Optional reduced-transcendental path (exact only for hard 0/1 targets).
    out3 = jax.block_until_ready(
        focal_loss(inputs, targets, alpha=0.8, gamma=2, binary_targets=True))
    assert jnp.allclose(out3, ref, rtol=1e-4, atol=1e-6), (out3, ref)

    print("KERNEL_OK")
</pallas_src>

<mosaic_0001>
module attributes {stable_mosaic.version = 11 : i64} {
  func.func @_focal_loss_kernel(%arg0: i32, %arg1: i32, %arg2: memref<16x128xf32, #tpu.memory_space<vmem>>, %arg3: memref<16x128xf32, #tpu.memory_space<vmem>>, %arg4: memref<8x128xf32, #tpu.memory_space<vmem>>) attributes {dimension_semantics = [#tpu.dimension_semantics<parallel>, #tpu.dimension_semantics<arbitrary>], iteration_bounds = array<i64: 1, 1>, scalar_prefetch = 0 : i64, scratch_operands = 0 : i64, tpu.core_type = #tpu.core_type<tc>, window_params = [{transform_indices = @transform_0, window_bounds = array<i64: 16, 128>}, {transform_indices = @transform_1, window_bounds = array<i64: 16, 128>}, {transform_indices = @transform_2, window_bounds = array<i64: 8, 128>}]} {
    %c0_i32 = arith.constant 0 : i32
    %0 = arith.cmpi eq, %arg1, %c0_i32 : i32
    %1 = arith.extui %0 : i1 to i32
    %c0_i32_0 = arith.constant 0 : i32
    %2 = arith.cmpi ne, %1, %c0_i32_0 : i32
    scf.if %2 {
      %cst_18 = arith.constant 0.000000e+00 : f32
      %37 = vector.broadcast %cst_18 : f32 to vector<8x128xf32>
      %c0_19 = arith.constant 0 : index
      %c0_20 = arith.constant 0 : index
      %38 = vector.load %arg4[%c0_19, %c0_20] : memref<8x128xf32, #tpu.memory_space<vmem>>, vector<8x128xf32>
      tpu.vector_store %arg4[%c0_19, %c0_20], %37 {strides = array<i32>} : memref<8x128xf32, #tpu.memory_space<vmem>>, vector<8x128xf32>,
    } else {
    }
    %c0 = arith.constant 0 : index
    %c0_1 = arith.constant 0 : index
    %3 = vector.load %arg2[%c0, %c0_1] : memref<16x128xf32, #tpu.memory_space<vmem>>, vector<16x128xf32>
    %c0_2 = arith.constant 0 : index
    %c0_3 = arith.constant 0 : index
    %4 = vector.load %arg3[%c0_2, %c0_3] : memref<16x128xf32, #tpu.memory_space<vmem>>, vector<16x128xf32>
    %5 = math.log %3 : vector<16x128xf32>
    %cst = arith.constant -1.000000e+02 : f32
    %6 = vector.broadcast %cst : f32 to vector<16x128xf32>
    %7 = arith.maximumf %5, %6 : vector<16x128xf32>
    %cst_4 = arith.constant 1.000000e+00 : f32
    %8 = vector.broadcast %cst_4 : f32 to vector<16x128xf32>
    %9 = arith.subf %8, %3 : vector<16x128xf32>
    %10 = math.log %9 : vector<16x128xf32>
    %cst_5 = arith.constant -1.000000e+02 : f32
    %11 = vector.broadcast %cst_5 : f32 to vector<16x128xf32>
    %12 = arith.maximumf %10, %11 : vector<16x128xf32>
    %13 = arith.mulf %4, %7 : vector<16x128xf32>
    %cst_6 = arith.constant 1.000000e+00 : f32
    %14 = vector.broadcast %cst_6 : f32 to vector<16x128xf32>
    %15 = arith.subf %14, %4 : vector<16x128xf32>
    %16 = arith.mulf %15, %12 : vector<16x128xf32>
    %17 = arith.addf %13, %16 : vector<16x128xf32>
    %cst_7 = arith.constant 0.000000e+00 : f32
    %18 = vector.broadcast %cst_7 : f32 to vector<16x128xf32>
    %19 = arith.subf %18, %17 : vector<16x128xf32>
    %cst_8 = arith.constant 0.000000e+00 : f32
    %20 = vector.broadcast %cst_8 : f32 to vector<16x128xf32>
    %21 = arith.subf %20, %19 : vector<16x128xf32>
    %22 = math.exp %21 : vector<16x128xf32>
    %cst_9 = arith.constant 1.000000e+00 : f32
    %23 = vector.broadcast %cst_9 : f32 to vector<16x128xf32>
    %24 = arith.subf %23, %22 : vector<16x128xf32>
    %25 = arith.mulf %24, %24 : vector<16x128xf32>
    %cst_10 = arith.constant 8.000000e-01 : f32
    %26 = vector.broadcast %cst_10 : f32 to vector<16x128xf32>
    %27 = arith.mulf %26, %25 : vector<16x128xf32>
    %28 = arith.mulf %27, %19 : vector<16x128xf32>
    %29 = vector.shape_cast %28 : vector<16x128xf32> to vector<2x8x128xf32>
    %cst_11 = arith.constant dense<0.000000e+00> : vector<8x128xf32>
    %30 = vector.multi_reduction <add>, %29, %cst_11 [0] : vector<2x8x128xf32> to vector<8x128xf32>
    %c0_12 = arith.constant 0 : index
    %c0_13 = arith.constant 0 : index
    %31 = vector.load %arg4[%c0_12, %c0_13] : memref<8x128xf32, #tpu.memory_space<vmem>>, vector<8x128xf32>
    %32 = arith.addf %31, %30 : vector<8x128xf32>
    %c0_14 = arith.constant 0 : index
    %c0_15 = arith.constant 0 : index
    %33 = vector.load %arg4[%c0_14, %c0_15] : memref<8x128xf32, #tpu.memory_space<vmem>>, vector<8x128xf32>
    tpu.vector_store %arg4[%c0_14, %c0_15], %32 {strides = array<i32>} : memref<8x128xf32, #tpu.memory_space<vmem>>, vector<8x128xf32>,
    %c0_i32_16 = arith.constant 0 : i32
    %34 = arith.cmpi eq, %arg1, %c0_i32_16 : i32
    %35 = arith.extui %34 : i1 to i32
    %c0_i32_17 = arith.constant 0 : i32
    %36 = arith.cmpi ne, %35, %c0_i32_17 : i32
    scf.if %36 {
      %c0_18 = arith.constant 0 : index
      %c0_19 = arith.constant 0 : index
      %37 = vector.load %arg4[%c0_18, %c0_19] : memref<8x128xf32, #tpu.memory_space<vmem>>, vector<8x128xf32>
      %cst_20 = arith.constant 4.8828125E-4 : f32
      %38 = vector.broadcast %cst_20 : f32 to vector<8x128xf32>
      %39 = arith.mulf %37, %38 : vector<8x128xf32>
      %c0_21 = arith.constant 0 : index
      %c0_22 = arith.constant 0 : index
      %40 = vector.load %arg4[%c0_21, %c0_22] : memref<8x128xf32, #tpu.memory_space<vmem>>, vector<8x128xf32>
      tpu.vector_store %arg4[%c0_21, %c0_22], %39 {strides = array<i32>} : memref<8x128xf32, #tpu.memory_space<vmem>>, vector<8x128xf32>,
    } else {
    }
    return
  }
  func.func @transform_0(%arg0: i32, %arg1: i32) -> (i32, i32) {
    %c1_i32 = arith.constant 1 : i32
    %0 = arith.muli %arg0, %c1_i32 : i32
    %1 = arith.addi %0, %arg1 : i32
    %c0_i32 = arith.constant 0 : i32
    %2 = arith.minsi %1, %c0_i32 : i32
    %c0_i32_0 = arith.constant 0 : i32
    %c0_i32_1 = arith.constant 0 : i32
    return %2, %c0_i32_0 : i32, i32
  }
  func.func @transform_1(%arg0: i32, %arg1: i32) -> (i32, i32) {
    %c1_i32 = arith.constant 1 : i32
    %0 = arith.muli %arg0, %c1_i32 : i32
    %1 = arith.addi %0, %arg1 : i32
    %c0_i32 = arith.constant 0 : i32
    %2 = arith.minsi %1, %c0_i32 : i32
    %c0_i32_0 = arith.constant 0 : i32
    %c0_i32_1 = arith.constant 0 : i32
    return %2, %c0_i32_0 : i32, i32
  }
  func.func @transform_2(%arg0: i32, %arg1: i32) -> (i32, i32) {
    %c0_i32 = arith.constant 0 : i32
    %c0_i32_0 = arith.constant 0 : i32
    return %c0_i32, %arg0 : i32, i32
  }
}

</mosaic_0001>

<bundles_post_ra>
// kernel: tpu_custom_call.1
= control target key start
LH: loop header
LB: loop body
LE: loop exit
PB: predicated region body
PF: predicated region fallthrough
CT: control target
= control target key end

     0   :  { %7 = vsyncpa [#allocation3], 0  ;;  %s283_s0 = inlined_call_operand.hbm [shape: f32[16,128], index: 0, kind: input, shape index: {}]   ;;  %s284_s1 = inlined_call_operand.hbm [shape: f32[16,128], index: 1, kind: input, shape index: {}]   ;;  %s285_s2 = inlined_call_operand.hbm [shape: f32[8,128], index: 2, kind: output, shape index: {}]  }
   0x1   :  { %8 = vsyncpa [#allocation6], 0 }
   0x2   :  { %9 = vsyncpa [#allocation4], 0  ;;  %s227_s9 = smov [#allocation2]   ;;  %s155_s13 = scalar_lea.hbm %s283_s0, 256 }
   0x3   :  { %s21_s10 = sshll.u32 %s227_s9, 4  ;;  %p156_p0 = scmp.ne.s32.totalorder %s283_s0, %s155_s13  ;;  %s22_s10 = int_to_ptr.vmem [resolvable:$true] %s21_s10 }
   0x4   :  { %p159_p1 = scmp.lt.u32.totalorder %s155_s13, %s283_s0 }
   0x6   :  { %p161_p2 = pnand %p159_p1, %p156_p0 }
   0x8   :  { %164 = shalt.err (!%p161_p2)
}
   0x9   :  { %s165_s18 = scalar_lea.vmem %s22_s10, 256  ;;  %p170_p4 = scmp.lt.s32.totalorder %s22_s10, %s22_s10 }
   0xa   :  { %p166_p3 = scmp.ne.s32.totalorder %s22_s10, %s165_s18  ;;  %p171_p5 = scmp.lt.s32.totalorder %s165_s18, %s165_s18 }
   0xc   :  { %p172_p6 = por %p171_p5, %p170_p4 }
   0xe   :  { %p173_p7 = pnand %p172_p6, %p166_p3 }
  0x10   :  { %176 = shalt.err (!%p173_p7)
}
  0x11   :  { %s228_s19 = smov 128   ;;  %s229_s20 = smov 8  }
  0x12   :  { %27 = dma.hbm_to_vmem [thread:$0]  %s283_s0, 256, %s22_s10, [#allocation3], %s228_s19, %s228_s19, %s229_s20  }
  0x13   :  { %s230_s23 = smov [#allocation5]   ;;  %s177_s27 = scalar_lea.hbm %s284_s1, 256 }
  0x14   :  { %s39_s24 = sshll.u32 %s230_s23, 4  ;;  %p178_p8 = scmp.ne.s32.totalorder %s284_s1, %s177_s27  ;;  %s40_s24 = int_to_ptr.vmem [resolvable:$true] %s39_s24 }
  0x15   :  { %p181_p9 = scmp.lt.u32.totalorder %s177_s27, %s284_s1 }
  0x17   :  { %p183_p10 = pnand %p181_p9, %p178_p8 }
  0x19   :  { %186 = shalt.err (!%p183_p10)
}
  0x1a   :  { %s187_s4 = scalar_lea.vmem %s40_s24, 256  ;;  %p192_p12 = scmp.lt.s32.totalorder %s40_s24, %s40_s24 }
  0x1b   :  { %p188_p11 = scmp.ne.s32.totalorder %s40_s24, %s187_s4  ;;  %p193_p13 = scmp.lt.s32.totalorder %s187_s4, %s187_s4 }
  0x1d   :  { %p194_p0 = por %p193_p13, %p192_p12 }
  0x1f   :  { %p195_p1 = pnand %p194_p0, %p188_p11 }
  0x21   :  { %198 = shalt.err (!%p195_p1)
}
  0x22   :  { %45 = dma.hbm_to_vmem [thread:$0]  %s284_s1, 256, %s40_s24, [#allocation6], %s228_s19, %s228_s19, %s229_s20  }
  0x23   :  { %221 = dma.done.wait [#allocation3], 256  }
  0x24   :  { %222 = vsyncadd [#allocation3], 4294967040 }
  0x25   :  { %223 = dma.done.wait [#allocation6], 256  }
  0x26   :  { %224 = vsyncadd [#allocation6], 4294967040  ;;  %v65_v0 = vld [vmem:[#allocation2] sm:$0xff]  ;;  %v66_v1 = vld [vmem:[#allocation2 + $0x8] sm:$0xff]  ;;  %s231_s1 = smov [#allocation7]  }
  0x27   :  { %143 = vlog2.f32 %v65_v0  ;;  %v75_v2 = vsub.f32 1.0, %v65_v0  ;;  %v76_v3 = vsub.f32 1.0, %v66_v1  ;;  %v67_v5 = vld [vmem:[#allocation5] sm:$0xff]  ;;  %v68_v7 = vld [vmem:[#allocation5 + $0x8] sm:$0xff]  ;;  %s123_s6 = sshll.u32 %s231_s1, 4  ;;  %s124_s6 = int_to_ptr.vmem [resolvable:$true] %s123_s6 }
  0x28   :  { %145 = vlog2.f32 %v66_v1  ;;  %v85_v14 = vsub.f32 1.0, %v67_v5  ;;  %v86_v17 = vsub.f32 1.0, %v68_v7  ;;  %s199_s7 = scalar_lea.vmem %s124_s6, 128  ;;  %p204_p3 = scmp.lt.s32.totalorder %s124_s6, %s124_s6 }
  0x29   :  { %147 = vlog2.f32 %v75_v2  ;;  %p200_p2 = scmp.ne.s32.totalorder %s124_s6, %s199_s7  ;;  %p205_p4 = scmp.lt.s32.totalorder %s199_s7, %s199_s7 }
  0x2a   :  { %149 = vlog2.f32 %v76_v3 }
  0x2b   :  { %p206_p5 = por %p205_p4, %p204_p3 }
  0x2d   :  { %p207_p6 = pnand %p206_p5, %p200_p2 }
  0x31   :  { %v144_v4 = vpop.eup %143 }
  0x32   :  { %v146_v6 = vpop.eup %145  ;;  %v70_v8 = vmul.f32 0.6931472, %v144_v4 }
  0x33   :  { %v148_v9 = vpop.eup %147  ;;  %v72_v10 = vmul.f32 0.6931472, %v146_v6 }
  0x34   :  { %v150_v11 = vpop.eup %149  ;;  %v73_v12 = vmax.f32 %v70_v8, -100.0  ;;  %v78_v13 = vmul.f32 0.6931472, %v148_v9 }
  0x35   :  { %v74_v15 = vmax.f32 %v72_v10, -100.0  ;;  %v80_v16 = vmul.f32 0.6931472, %v150_v11 }
  0x36   :  { %v81_v18 = vmax.f32 %v78_v13, -100.0  ;;  %v83_v19 = vmul.f32 %v73_v12, %v67_v5 }
  0x37   :  { %v82_v20 = vmax.f32 %v80_v16, -100.0  ;;  %v84_v21 = vmul.f32 %v74_v15, %v68_v7 }
  0x38   :  { %v87_v22 = vmul.f32 %v85_v14, %v81_v18 }
  0x39   :  { %v88_v23 = vmul.f32 %v86_v17, %v82_v20 }
  0x3a   :  { %v89_v24 = vadd.f32 %v87_v22, %v83_v19 }
  0x3b   :  { %v90_v25 = vadd.f32 %v88_v23, %v84_v21 }
  0x3c   :  { %v91_v26 = vsub.f32 0.0, %v89_v24 }
  0x3d   :  { %v92_v27 = vsub.f32 0.0, %v90_v25 }
  0x3e   :  { %v93_v28 = vsub.f32 0.0, %v91_v26 }
  0x3f   :  { %v94_v29 = vsub.f32 0.0, %v92_v27 }
  0x40   :  { %v95_v30 = vmul.f32 1.442695, %v93_v28 }
  0x41   :  { %v97_v31 = vmul.f32 1.442695, %v94_v29 }
  0x42   :  { %151 = vpow2.f32 %v95_v30 }
  0x43   :  { %153 = vpow2.f32 %v97_v31 }
  0x4c   :  { %v152_v32 = vpop.eup %151 }
  0x4d   :  { %v154_v33 = vpop.eup %153  ;;  %v99_v34 = vsub.f32 1.0, %v152_v32 }
  0x4e   :  { %v100_v35 = vsub.f32 1.0, %v154_v33 }
  0x4f   :  { %v101_v36 = vmul.f32 %v99_v34, %v99_v34 }
  0x50   :  { %v102_v37 = vmul.f32 %v100_v35, %v100_v35 }
  0x51   :  { %v103_v38 = vmul.f32 0.8, %v101_v36 }
  0x52   :  { %v104_v39 = vmul.f32 0.8, %v102_v37 }
  0x53   :  { %v105_v40 = vmul.f32 %v103_v38, %v91_v26 }
  0x54   :  { %v106_v41 = vmul.f32 %v104_v39, %v92_v27 }
  0x56   :  { %v107_v42 = vadd.f32 %v106_v41, %v105_v40 }
  0x58   :  { %v115_v43 = vmul.f32 0.00048828125, %v107_v42 }
  0x5a   :  { %116 = vst [vmem:[#allocation7] sm:$0xff] %v115_v43 }
  0x5b   :  { %210 = shalt.err (!%p207_p6)
}
  0x5c   :  { %s211_s10 = scalar_lea.hbm %s285_s2, 128 }
  0x5d   :  { %p212_p7 = scmp.ne.s32.totalorder %s285_s2, %s211_s10  ;;  %p215_p8 = scmp.lt.u32.totalorder %s211_s10, %s285_s2 }
  0x5f   :  { %p217_p9 = pnand %p215_p8, %p212_p7 }
  0x61   :  { %220 = shalt.err (!%p217_p9)
}
  0x62   :  { %126 = dma.vmem_to_hbm [thread:$0]  %s124_s6, 128, %s285_s2, [#allocation4]  }
  0x63   :  { %225 = dma.done.wait [#allocation4], 128  }
  0x64   :  { %226 = vsyncadd [#allocation4], 4294967168 }
  0x65   :  { %130 = vsyncpa [#allocation3], 1 }
  0x66   :  { %131 = vsyncpa [#allocation6], 1 }
  0x67   :  { %132 = vsyncpa [#allocation4], 1 }

</bundles_post_ra>
